<compile_context>
chip_gen: v7x
topology: tpu7x:2x2x1
jax: 0.10.0
libtpu: 0.0.40
codegen_flags: <defaults>
</compile_context>

<pallas_src>
import functools

import jax
import jax.numpy as jnp
from jax.experimental import pallas as pl
from jax.experimental.pallas import tpu as pltpu

LANE = 128
BIG_PAD = 512  # dims larger than this are padded to multiples of 512


def _round_up(x, m):
    return ((x + m - 1) // m) * m


def _pad_dim(d):
    """128-pad small dims; 512-pad larger ones so big tiles always divide."""
    if d <= BIG_PAD:
        return _round_up(d, LANE)
    return _round_up(d, BIG_PAD)


def _vmem_budget_bytes():
    """Per-chip VMEM budget: ~70% of physical capacity, capped at 100 MiB."""
    cap = None
    try:
        info = pltpu.get_tpu_info()
        cap = getattr(info, "vmem_capacity_bytes", None)
    except Exception:
        cap = None
    if cap is None:
        cap = 64 * 1024 * 1024  # conservative (v7x) fallback
    return int(min(0.70 * cap, 100 * 1024 * 1024))


def _dtype_bytes(dt):
    return jnp.dtype(dt).itemsize


# ----------------------------------------------------------------------------
# Kernels
# ----------------------------------------------------------------------------
def _mm_resident_kernel(a_ref, b_ref, o_ref, *, apply_relu):
    z = jnp.dot(a_ref[...], b_ref[...], preferred_element_type=jnp.float32)
    if apply_relu:
        z = jnp.maximum(z, 0.0)
    o_ref[...] = z.astype(o_ref.dtype)


def _mm_resident_bias_kernel(a_ref, b_ref, bias_ref, o_ref, *, apply_relu):
    z = jnp.dot(a_ref[...], b_ref[...], preferred_element_type=jnp.float32)
    z = z + bias_ref[...].astype(jnp.float32)
    if apply_relu:
        z = jnp.maximum(z, 0.0)
    o_ref[...] = z.astype(o_ref.dtype)


def _mm_acc_kernel(a_ref, b_ref, o_ref, acc_ref, *, apply_relu):
    k = pl.program_id(2)

    @pl.when(k == 0)
    def _init():
        acc_ref[...] = jnp.zeros_like(acc_ref)

    acc_ref[...] += jnp.dot(a_ref[...], b_ref[...],
                            preferred_element_type=jnp.float32)

    @pl.when(k == pl.num_programs(2) - 1)
    def _fin():
        z = acc_ref[...]
        if apply_relu:
            z = jnp.maximum(z, 0.0)
        o_ref[...] = z.astype(o_ref.dtype)


def _mm_acc_bias_kernel(a_ref, b_ref, bias_ref, o_ref, acc_ref, *, apply_relu):
    k = pl.program_id(2)

    @pl.when(k == 0)
    def _init():
        acc_ref[...] = jnp.zeros_like(acc_ref)

    acc_ref[...] += jnp.dot(a_ref[...], b_ref[...],
                            preferred_element_type=jnp.float32)

    @pl.when(k == pl.num_programs(2) - 1)
    def _fin():
        z = acc_ref[...] + bias_ref[...].astype(jnp.float32)
        if apply_relu:
            z = jnp.maximum(z, 0.0)
        o_ref[...] = z.astype(o_ref.dtype)


# ----------------------------------------------------------------------------
# Matmul dispatcher: resident-B path when it fits VMEM, tiled (i,j,k) fallback
# ----------------------------------------------------------------------------
def fused_matmul(a, b, bias=None, *, apply_relu=False, out_dtype=jnp.float32,
                 force_tiled=False):
    """C = A @ B (+ bias) (+ ReLU).  Dims must be multiples of 128
    (and of 512 when the padded extent exceeds 512)."""
    m, k = a.shape
    k2, n = b.shape
    assert k == k2, (a.shape, b.shape)
    budget = _vmem_budget_bytes()
    ab = _dtype_bytes(a.dtype)
    bb = _dtype_bytes(b.dtype)
    ob = _dtype_bytes(out_dtype)

    # ---------------- resident-B path ----------------
    if not force_tiled:
        tm_res = None
        for tm in (1024, 512, 256, 128):
            if m % tm != 0:
                continue
            need = (2 * tm * k * ab      # A row tile, double-buffered
                    + 2 * k * n * bb     # resident B (count both buffers)
                    + 2 * tm * n * ob    # output tile, double-buffered
                    + tm * n * 4         # in-kernel f32 dot result headroom
                    + 2 * n * 4)         # bias row
            if need <= budget:
                tm_res = tm
                break
        if tm_res is not None:
            in_specs = [
                pl.BlockSpec((tm_res, k), lambda i: (i, 0)),
                pl.BlockSpec((k, n), lambda i: (0, 0)),     # B fully resident
            ]
            if bias is not None:
                in_specs.append(pl.BlockSpec((1, n), lambda i: (0, 0)))
                kernel = functools.partial(_mm_resident_bias_kernel,
                                           apply_relu=apply_relu)
                args = (a, b, bias)
            else:
                kernel = functools.partial(_mm_resident_kernel,
                                           apply_relu=apply_relu)
                args = (a, b)
            return pl.pallas_call(
                kernel,
                out_shape=jax.ShapeDtypeStruct((m, n), out_dtype),
                grid=(m // tm_res,),
                in_specs=in_specs,
                out_specs=pl.BlockSpec((tm_res, n), lambda i: (i, 0)),
                compiler_params=pltpu.CompilerParams(
                    dimension_semantics=("parallel",),
                    vmem_limit_bytes=budget),
            )(*args)

    # ---------------- tiled (i, j, k) fallback ----------------
    def fits(tm, tn, tk):
        need = (3 * tm * tk * ab       # A, triple-buffered
                + 2 * tk * tn * bb     # B, double-buffered
                + 2 * tm * tn * ob     # out, double-buffered
                + tm * tn * 4          # f32 accumulator scratch
                + 2 * tn * 4)          # bias
        return need <= budget

    best = None
    for tm in (512, 256, 128):
        if m % tm:
            continue
        for tn in (512, 256, 128):
            if n % tn:
                continue
            for tk in (1024, 512, 256, 128):
                if k % tk:
                    continue
                if fits(tm, tn, tk):
                    best = (tm, tn, tk)
                    break
            if best:
                break
        if best:
            break
    assert best is not None, "no matmul tile fits the VMEM budget"
    tm, tn, tk = best
    grid = (m // tm, n // tn, k // tk)

    try:
        a_spec = pl.BlockSpec((tm, tk), lambda i, j, kk: (i, kk),
                              pipeline_mode=pl.Buffered(3))
    except TypeError:  # older BlockSpec without pipeline_mode
        a_spec = pl.BlockSpec((tm, tk), lambda i, j, kk: (i, kk))
    in_specs = [a_spec, pl.BlockSpec((tk, tn), lambda i, j, kk: (kk, j))]
    if bias is not None:
        in_specs.append(pl.BlockSpec((1, tn), lambda i, j, kk: (0, j)))
        kernel = functools.partial(_mm_acc_bias_kernel, apply_relu=apply_relu)
        args = (a, b, bias)
    else:
        kernel = functools.partial(_mm_acc_kernel, apply_relu=apply_relu)
        args = (a, b)

    return pl.pallas_call(
        kernel,
        out_shape=jax.ShapeDtypeStruct((m, n), out_dtype),
        grid=grid,
        in_specs=in_specs,
        out_specs=pl.BlockSpec((tm, tn), lambda i, j, kk: (i, j)),
        scratch_shapes=[pltpu.VMEM((tm, tn), jnp.float32)],
        compiler_params=pltpu.CompilerParams(
            dimension_semantics=("parallel", "parallel", "arbitrary"),
            vmem_limit_bytes=budget),
    )(*args)


# ----------------------------------------------------------------------------
# gcn_norm (dense, built directly at padded size + target dtype), params, fwd
# ----------------------------------------------------------------------------
def gcn_norm_dense_padded(edge_index, edge_weight, num_nodes, n_pad, dtype):
    """Dense D^-1/2 (A + I) D^-1/2 matching torch_geometric's gcn_norm,
    scattered straight into an (n_pad, n_pad) buffer of the compute dtype.
    Aggregation is out[col] += norm * x[row]  =>  A[col, row] = norm."""
    row = edge_index[0]
    col = edge_index[1]
    if edge_weight is None:
        edge_weight = jnp.ones(row.shape[0], dtype=jnp.float32)
    loop = jnp.arange(num_nodes, dtype=row.dtype)
    row = jnp.concatenate([row, loop])
    col = jnp.concatenate([col, loop])
    w = jnp.concatenate([edge_weight.astype(jnp.float32),
                         jnp.ones(num_nodes, dtype=jnp.float32)])

    deg = jnp.zeros(num_nodes, dtype=jnp.float32).at[col].add(w)
    deg_inv_sqrt = jnp.where(deg > 0.0, jax.lax.rsqrt(deg), 0.0)
    norm = deg_inv_sqrt[row] * w * deg_inv_sqrt[col]

    a_hat = jnp.zeros((n_pad, n_pad), dtype=dtype)
    a_hat = a_hat.at[col, row].add(norm.astype(dtype))
    return a_hat


def glorot(key, shape):
    fan_in, fan_out = shape
    limit = jnp.sqrt(6.0 / (fan_in + fan_out))
    return jax.random.uniform(key, shape, jnp.float32, -limit, limit)


def init_gconv_params(key, input_dim, hidden_dim, output_dim, num_layers):
    dims = [input_dim] + [hidden_dim] * (num_layers - 1) + [output_dim]
    params = []
    for i in range(num_layers):
        key, sub = jax.random.split(key)
        w = glorot(sub, (dims[i], dims[i + 1]))          # stored as [in, out]
        b = jnp.zeros((1, dims[i + 1]), dtype=jnp.float32)
        params.append((w, b))
    return params


def gconv_forward(params, x, edge_index, edge_weight=None, *,
                  compute_dtype=jnp.bfloat16):
    """GConv forward: ReLU between layers, no activation after the last one."""
    n, f_in = x.shape
    f_out_final = params[-1][0].shape[1]
    n_p = _pad_dim(n)

    # Normalized adjacency, built once at padded size/dtype, reused per layer.
    a_hat = gcn_norm_dense_padded(edge_index, edge_weight, n, n_p,
                                  compute_dtype)

    f_in_p = _pad_dim(f_in)
    z = jnp.pad(x, ((0, n_p - n), (0, f_in_p - f_in))).astype(compute_dtype)

    for i, (w, b) in enumerate(params):
        fi, fo = w.shape
        fi_p, fo_p = _pad_dim(fi), _pad_dim(fo)
        w_p = jnp.pad(w, ((0, fi_p - fi), (0, fo_p - fo))).astype(compute_dtype)
        b_p = jnp.pad(b, ((0, 0), (0, fo_p - fo)))            # bias stays f32
        last = i == len(params) - 1

        # Stage 1: H = Z @ W.  W is tiny -> fully VMEM-resident, 1-D row grid.
        h = fused_matmul(z, w_p, out_dtype=compute_dtype)

        # Stage 2: Z = A_hat @ H + b (+ReLU).  H is kept VMEM-resident whenever
        # it fits the per-chip budget so the dominant A_hat stream is read
        # from HBM exactly once per layer.
        out_dtype = jnp.float32 if last else compute_dtype
        z = fused_matmul(a_hat, h, bias=b_p, apply_relu=not last,
                         out_dtype=out_dtype)

    return z[:n, :f_out_final]


# pure-JAX f32 reference for sanity checking
def gconv_forward_ref(params, x, edge_index, edge_weight=None):
    n = x.shape[0]
    a_hat = gcn_norm_dense_padded(edge_index, edge_weight, n, n, jnp.float32)
    z = x
    for i, (w, b) in enumerate(params):
        z = a_hat @ (z @ w) + b
        if i != len(params) - 1:
            z = jnp.maximum(z, 0.0)
    return z


if __name__ == "__main__":
    key = jax.random.PRNGKey(0)

    # small synthetic graph: N nodes, ring edges in both directions
    N = 16
    INPUT_DIM, HIDDEN_DIM, OUTPUT_DIM, NUM_LAYERS = 8, 32, 16, 3

    src = jnp.arange(N, dtype=jnp.int32)
    dst = (src + 1) % N
    edge_index = jnp.stack(
        [jnp.concatenate([src, dst]), jnp.concatenate([dst, src])], axis=0)
    key, k_w, k_x = jax.random.split(key, 3)
    edge_weight = jax.random.uniform(k_w, (edge_index.shape[1],),
                                     jnp.float32, 0.5, 1.5)
    x = jax.random.normal(k_x, (N, INPUT_DIM), jnp.float32)

    params = init_gconv_params(key, INPUT_DIM, HIDDEN_DIM, OUTPUT_DIM,
                               NUM_LAYERS)

    ref = gconv_forward_ref(params, x, edge_index, edge_weight)

    # exact f32 compute path (tight check), jitted end-to-end
    fwd_f32 = jax.jit(functools.partial(gconv_forward,
                                        compute_dtype=jnp.float32))
    out_f32 = jax.block_until_ready(fwd_f32(params, x, edge_index, edge_weight))
    assert out_f32.shape == (N, OUTPUT_DIM)
    assert jnp.allclose(out_f32, ref, atol=1e-4, rtol=1e-4)

    # bf16 compute path (default; recommended) — looser tolerance
    fwd_bf16 = jax.jit(functools.partial(gconv_forward,
                                         compute_dtype=jnp.bfloat16))
    out_bf16 = jax.block_until_ready(
        fwd_bf16(params, x, edge_index, edge_weight))
    assert out_bf16.shape == (N, OUTPUT_DIM)
    assert jnp.allclose(out_bf16, ref, atol=5e-2, rtol=5e-2)

    # also exercise the tiled (i, j, k) fallback path (the small GConv shapes
    # above only use the resident-B path)
    key, ka, kb, kc = jax.random.split(key, 4)
    A = jax.random.normal(ka, (512, 2048), jnp.float32)
    B = jax.random.normal(kb, (2048, 256), jnp.float32)
    bias_t = jax.random.normal(kc, (1, 256), jnp.float32)
    C_res = fused_matmul(A, B, bias=bias_t, apply_relu=True)
    C_tiled = fused_matmul(A, B, bias=bias_t, apply_relu=True,
                           force_tiled=True)
    C_res, C_tiled = jax.block_until_ready((C_res, C_tiled))
    assert jnp.allclose(C_res, C_tiled, atol=1e-3, rtol=1e-3)
    C_ref = jnp.maximum(A @ B + bias_t, 0.0)
    rel_err = jnp.max(jnp.abs(C_tiled - C_ref)) / (jnp.max(jnp.abs(C_ref)) + 1e-6)
    assert rel_err < 5e-2

    print("KERNEL_OK")
</pallas_src>

<mosaic_0001>
module attributes {stable_mosaic.version = 11 : i64} {
  func.func private @main(%arg0: i32) attributes {dimension_semantics = [#tpu.dimension_semantics<core_parallel>], iteration_bounds = array<i64: 2>, tpu.core_type = #tpu.core_type<sc_scalar_subcore>, window_params = []} {
    return
  }
}

module attributes {stable_mosaic.version = 11 : i64} {
  func.func private @main(%arg0: i32) attributes {dimension_semantics = [#tpu.dimension_semantics<core_parallel>], iteration_bounds = array<i64: 2>, tpu.core_type = #tpu.core_type<sc_scalar_subcore>, window_params = []} {
    return
  }
}

module attributes {stable_mosaic.version = 11 : i64} {
  func.func @_mm_resident_bias_kernel(%arg0: i32, %arg1: memref<128x128xf32, #tpu.memory_space<vmem>>, %arg2: memref<128x128xf32, #tpu.memory_space<vmem>>, %arg3: memref<1x128xf32, #tpu.memory_space<vmem>>, %arg4: memref<128x128xf32, #tpu.memory_space<vmem>>) attributes {dimension_semantics = [#tpu.dimension_semantics<parallel>], iteration_bounds = array<i64: 1>, scalar_prefetch = 0 : i64, scratch_operands = 0 : i64, tpu.core_type = #tpu.core_type<tc>, window_params = [{transform_indices = @transform_0, window_bounds = array<i64: 128, 128>}, {pipeline_mode = #tpu.pipeline_mode<synchronous>, transform_indices = @transform_1, window_bounds = array<i64: 128, 128>}, {pipeline_mode = #tpu.pipeline_mode<synchronous>, transform_indices = @transform_2, window_bounds = array<i64: 1, 128>}, {transform_indices = @transform_3, window_bounds = array<i64: 128, 128>}]} {
    %c0 = arith.constant 0 : index
    %c0_0 = arith.constant 0 : index
    %0 = vector.load %arg1[%c0, %c0_0] : memref<128x128xf32, #tpu.memory_space<vmem>>, vector<128x128xf32>
    %c0_1 = arith.constant 0 : index
    %c0_2 = arith.constant 0 : index
    %1 = vector.load %arg2[%c0_1, %c0_2] : memref<128x128xf32, #tpu.memory_space<vmem>>, vector<128x128xf32>
    %cst = arith.constant dense<0.000000e+00> : vector<128x128xf32>
    %2 = tpu.matmul %0, %1, %cst {dimension_numbers = #tpu.dot_dimension_numbers<[1], [0], [0], [1], [0, 0, 1, 1], [], []>} : vector<128x128xf32>, vector<128x128xf32>, vector<128x128xf32> -> vector<128x128xf32>
    %c0_3 = arith.constant 0 : index
    %c0_4 = arith.constant 0 : index
    %3 = vector.load %arg3[%c0_3, %c0_4] : memref<1x128xf32, #tpu.memory_space<vmem>>, vector<1x128xf32>
    %4 = vector.broadcast %3 : vector<1x128xf32> to vector<128x128xf32>
    %5 = arith.addf %2, %4 : vector<128x128xf32>
    %cst_5 = arith.constant 0.000000e+00 : f32
    %6 = vector.broadcast %cst_5 : f32 to vector<128x128xf32>
    %7 = arith.maximumf %5, %6 : vector<128x128xf32>
    %c0_6 = arith.constant 0 : index
    %c0_7 = arith.constant 0 : index
    %8 = vector.load %arg4[%c0_6, %c0_7] : memref<128x128xf32, #tpu.memory_space<vmem>>, vector<128x128xf32>
    tpu.vector_store %arg4[%c0_6, %c0_7], %7 {strides = array<i32>} : memref<128x128xf32, #tpu.memory_space<vmem>>, vector<128x128xf32>,
    return
  }
  func.func @transform_0(%arg0: i32) -> (i32, i32) {
    %c0_i32 = arith.constant 0 : i32
    %c0_i32_0 = arith.constant 0 : i32
    return %arg0, %c0_i32 : i32, i32
  }
  func.func @transform_1(%arg0: i32) -> (i32, i32) {
    %c0_i32 = arith.constant 0 : i32
    %c0_i32_0 = arith.constant 0 : i32
    %c0_i32_1 = arith.constant 0 : i32
    return %c0_i32, %c0_i32_0 : i32, i32
  }
  func.func @transform_2(%arg0: i32) -> (i32, i32) {
    %c0_i32 = arith.constant 0 : i32
    %c0_i32_0 = arith.constant 0 : i32
    %c0_i32_1 = arith.constant 0 : i32
    return %c0_i32, %c0_i32_0 : i32, i32
  }
  func.func @transform_3(%arg0: i32) -> (i32, i32) {
    %c0_i32 = arith.constant 0 : i32
    %c0_i32_0 = arith.constant 0 : i32
    return %arg0, %c0_i32 : i32, i32
  }
}

module attributes {stable_mosaic.version = 11 : i64} {
  func.func @_mm_resident_kernel(%arg0: i32, %arg1: memref<128x128xf32, #tpu.memory_space<vmem>>, %arg2: memref<128x128xf32, #tpu.memory_space<vmem>>, %arg3: memref<128x128xf32, #tpu.memory_space<vmem>>) attributes {dimension_semantics = [#tpu.dimension_semantics<parallel>], iteration_bounds = array<i64: 1>, scalar_prefetch = 0 : i64, scratch_operands = 0 : i64, tpu.core_type = #tpu.core_type<tc>, window_params = [{transform_indices = @transform_0, window_bounds = array<i64: 128, 128>}, {pipeline_mode = #tpu.pipeline_mode<synchronous>, transform_indices = @transform_1, window_bounds = array<i64: 128, 128>}, {transform_indices = @transform_2, window_bounds = array<i64: 128, 128>}]} {
    %c0 = arith.constant 0 : index
    %c0_0 = arith.constant 0 : index
    %0 = vector.load %arg1[%c0, %c0_0] : memref<128x128xf32, #tpu.memory_space<vmem>>, vector<128x128xf32>
    %c0_1 = arith.constant 0 : index
    %c0_2 = arith.constant 0 : index
    %1 = vector.load %arg2[%c0_1, %c0_2] : memref<128x128xf32, #tpu.memory_space<vmem>>, vector<128x128xf32>
    %cst = arith.constant dense<0.000000e+00> : vector<128x128xf32>
    %2 = tpu.matmul %0, %1, %cst {dimension_numbers = #tpu.dot_dimension_numbers<[1], [0], [0], [1], [0, 0, 1, 1], [], []>} : vector<128x128xf32>, vector<128x128xf32>, vector<128x128xf32> -> vector<128x128xf32>
    %c0_3 = arith.constant 0 : index
    %c0_4 = arith.constant 0 : index
    %3 = vector.load %arg3[%c0_3, %c0_4] : memref<128x128xf32, #tpu.memory_space<vmem>>, vector<128x128xf32>
    tpu.vector_store %arg3[%c0_3, %c0_4], %2 {strides = array<i32>} : memref<128x128xf32, #tpu.memory_space<vmem>>, vector<128x128xf32>,
    return
  }
  func.func @transform_0(%arg0: i32) -> (i32, i32) {
    %c0_i32 = arith.constant 0 : i32
    %c0_i32_0 = arith.constant 0 : i32
    return %arg0, %c0_i32 : i32, i32
  }
  func.func @transform_1(%arg0: i32) -> (i32, i32) {
    %c0_i32 = arith.constant 0 : i32
    %c0_i32_0 = arith.constant 0 : i32
    %c0_i32_1 = arith.constant 0 : i32
    return %c0_i32, %c0_i32_0 : i32, i32
  }
  func.func @transform_2(%arg0: i32) -> (i32, i32) {
    %c0_i32 = arith.constant 0 : i32
    %c0_i32_0 = arith.constant 0 : i32
    return %arg0, %c0_i32 : i32, i32
  }
}

module attributes {stable_mosaic.version = 11 : i64} {
  func.func @_mm_resident_bias_kernel(%arg0: i32, %arg1: memref<128x128xf32, #tpu.memory_space<vmem>>, %arg2: memref<128x128xf32, #tpu.memory_space<vmem>>, %arg3: memref<1x128xf32, #tpu.memory_space<vmem>>, %arg4: memref<128x128xf32, #tpu.memory_space<vmem>>) attributes {dimension_semantics = [#tpu.dimension_semantics<parallel>], iteration_bounds = array<i64: 1>, scalar_prefetch = 0 : i64, scratch_operands = 0 : i64, tpu.core_type = #tpu.core_type<tc>, window_params = [{transform_indices = @transform_0, window_bounds = array<i64: 128, 128>}, {pipeline_mode = #tpu.pipeline_mode<synchronous>, transform_indices = @transform_1, window_bounds = array<i64: 128, 128>}, {pipeline_mode = #tpu.pipeline_mode<synchronous>, transform_indices = @transform_2, window_bounds = array<i64: 1, 128>}, {transform_indices = @transform_3, window_bounds = array<i64: 128, 128>}]} {
    %c0 = arith.constant 0 : index
    %c0_0 = arith.constant 0 : index
    %0 = vector.load %arg1[%c0, %c0_0] : memref<128x128xf32, #tpu.memory_space<vmem>>, vector<128x128xf32>
    %c0_1 = arith.constant 0 : index
    %c0_2 = arith.constant 0 : index
    %1 = vector.load %arg2[%c0_1, %c0_2] : memref<128x128xf32, #tpu.memory_space<vmem>>, vector<128x128xf32>
    %cst = arith.constant dense<0.000000e+00> : vector<128x128xf32>
    %2 = tpu.matmul %0, %1, %cst {dimension_numbers = #tpu.dot_dimension_numbers<[1], [0], [0], [1], [0, 0, 1, 1], [], []>} : vector<128x128xf32>, vector<128x128xf32>, vector<128x128xf32> -> vector<128x128xf32>
    %c0_3 = arith.constant 0 : index
    %c0_4 = arith.constant 0 : index
    %3 = vector.load %arg3[%c0_3, %c0_4] : memref<1x128xf32, #tpu.memory_space<vmem>>, vector<1x128xf32>
    %4 = vector.broadcast %3 : vector<1x128xf32> to vector<128x128xf32>
    %5 = arith.addf %2, %4 : vector<128x128xf32>
    %cst_5 = arith.constant 0.000000e+00 : f32
    %6 = vector.broadcast %cst_5 : f32 to vector<128x128xf32>
    %7 = arith.maximumf %5, %6 : vector<128x128xf32>
    %c0_6 = arith.constant 0 : index
    %c0_7 = arith.constant 0 : index
    %8 = vector.load %arg4[%c0_6, %c0_7] : memref<128x128xf32, #tpu.memory_space<vmem>>, vector<128x128xf32>
    tpu.vector_store %arg4[%c0_6, %c0_7], %7 {strides = array<i32>} : memref<128x128xf32, #tpu.memory_space<vmem>>, vector<128x128xf32>,
    return
  }
  func.func @transform_0(%arg0: i32) -> (i32, i32) {
    %c0_i32 = arith.constant 0 : i32
    %c0_i32_0 = arith.constant 0 : i32
    return %arg0, %c0_i32 : i32, i32
  }
  func.func @transform_1(%arg0: i32) -> (i32, i32) {
    %c0_i32 = arith.constant 0 : i32
    %c0_i32_0 = arith.constant 0 : i32
    %c0_i32_1 = arith.constant 0 : i32
    return %c0_i32, %c0_i32_0 : i32, i32
  }
  func.func @transform_2(%arg0: i32) -> (i32, i32) {
    %c0_i32 = arith.constant 0 : i32
    %c0_i32_0 = arith.constant 0 : i32
    %c0_i32_1 = arith.constant 0 : i32
    return %c0_i32, %c0_i32_0 : i32, i32
  }
  func.func @transform_3(%arg0: i32) -> (i32, i32) {
    %c0_i32 = arith.constant 0 : i32
    %c0_i32_0 = arith.constant 0 : i32
    return %arg0, %c0_i32 : i32, i32
  }
}

module attributes {stable_mosaic.version = 11 : i64} {
  func.func @_mm_resident_bias_kernel(%arg0: i32, %arg1: memref<128x128xf32, #tpu.memory_space<vmem>>, %arg2: memref<128x128xf32, #tpu.memory_space<vmem>>, %arg3: memref<1x128xf32, #tpu.memory_space<vmem>>, %arg4: memref<128x128xf32, #tpu.memory_space<vmem>>) attributes {dimension_semantics = [#tpu.dimension_semantics<parallel>], iteration_bounds = array<i64: 1>, scalar_prefetch = 0 : i64, scratch_operands = 0 : i64, tpu.core_type = #tpu.core_type<tc>, window_params = [{transform_indices = @transform_0, window_bounds = array<i64: 128, 128>}, {pipeline_mode = #tpu.pipeline_mode<synchronous>, transform_indices = @transform_1, window_bounds = array<i64: 128, 128>}, {pipeline_mode = #tpu.pipeline_mode<synchronous>, transform_indices = @transform_2, window_bounds = array<i64: 1, 128>}, {transform_indices = @transform_3, window_bounds = array<i64: 128, 128>}]} {
    %c0 = arith.constant 0 : index
    %c0_0 = arith.constant 0 : index
    %0 = vector.load %arg1[%c0, %c0_0] : memref<128x128xf32, #tpu.memory_space<vmem>>, vector<128x128xf32>
    %c0_1 = arith.constant 0 : index
    %c0_2 = arith.constant 0 : index
    %1 = vector.load %arg2[%c0_1, %c0_2] : memref<128x128xf32, #tpu.memory_space<vmem>>, vector<128x128xf32>
    %cst = arith.constant dense<0.000000e+00> : vector<128x128xf32>
    %2 = tpu.matmul %0, %1, %cst {dimension_numbers = #tpu.dot_dimension_numbers<[1], [0], [0], [1], [0, 0, 1, 1], [], []>} : vector<128x128xf32>, vector<128x128xf32>, vector<128x128xf32> -> vector<128x128xf32>
    %c0_3 = arith.constant 0 : index
    %c0_4 = arith.constant 0 : index
    %3 = vector.load %arg3[%c0_3, %c0_4] : memref<1x128xf32, #tpu.memory_space<vmem>>, vector<1x128xf32>
    %4 = vector.broadcast %3 : vector<1x128xf32> to vector<128x128xf32>
    %5 = arith.addf %2, %4 : vector<128x128xf32>
    %c0_5 = arith.constant 0 : index
    %c0_6 = arith.constant 0 : index
    %6 = vector.load %arg4[%c0_5, %c0_6] : memref<128x128xf32, #tpu.memory_space<vmem>>, vector<128x128xf32>
    tpu.vector_store %arg4[%c0_5, %c0_6], %5 {strides = array<i32>} : memref<128x128xf32, #tpu.memory_space<vmem>>, vector<128x128xf32>,
    return
  }
  func.func @transform_0(%arg0: i32) -> (i32, i32) {
    %c0_i32 = arith.constant 0 : i32
    %c0_i32_0 = arith.constant 0 : i32
    return %arg0, %c0_i32 : i32, i32
  }
  func.func @transform_1(%arg0: i32) -> (i32, i32) {
    %c0_i32 = arith.constant 0 : i32
    %c0_i32_0 = arith.constant 0 : i32
    %c0_i32_1 = arith.constant 0 : i32
    return %c0_i32, %c0_i32_0 : i32, i32
  }
  func.func @transform_2(%arg0: i32) -> (i32, i32) {
    %c0_i32 = arith.constant 0 : i32
    %c0_i32_0 = arith.constant 0 : i32
    %c0_i32_1 = arith.constant 0 : i32
    return %c0_i32, %c0_i32_0 : i32, i32
  }
  func.func @transform_3(%arg0: i32) -> (i32, i32) {
    %c0_i32 = arith.constant 0 : i32
    %c0_i32_0 = arith.constant 0 : i32
    return %arg0, %c0_i32 : i32, i32
  }
}

</mosaic_0001>

<bundles_post_ra>
// kernel: gconv_forward.7
= control target key start
LH: loop header
LB: loop body
LE: loop exit
PB: predicated region body
PF: predicated region fallthrough
CT: control target
= control target key end

     0   :  { %8 = vsyncpa [#allocation3], 0  ;;  %s413_s12 = smov [#allocation2]   ;;  %s547_s0 = inlined_call_operand.hbm [shape: f32[128,128], index: 0, kind: input, shape index: {}]   ;;  %s548_s1 = inlined_call_operand.vmem [shape: f32[128,128], index: 1, kind: input, shape index: {}]   ;;  %s549_s2 = inlined_call_operand.vmem [shape: f32[1,128], index: 2, kind: input, shape index: {}]   ;;  %s550_s3 = inlined_call_operand.vmem [shape: f32[128,128], index: 3, kind: output, shape index: {}]  }
   0x1   :  { %s14_s13 = sshll.u32 %s413_s12, 4  ;;  %s389_s16 = scalar_lea.hbm %s547_s0, 2048  ;;  %s15_s13 = int_to_ptr.vmem [resolvable:$true] %s14_s13 }
   0x2   :  { %p390_p0 = scmp.ne.s32.totalorder %s547_s0, %s389_s16  ;;  %p393_p1 = scmp.lt.u32.totalorder %s389_s16, %s547_s0 }
   0x4   :  { %p395_p2 = pnand %p393_p1, %p390_p0 }
   0x6   :  { %398 = shalt.err (!%p395_p2)
}
   0x7   :  { %s399_s21 = scalar_lea.vmem %s15_s13, 2048  ;;  %p404_p4 = scmp.lt.s32.totalorder %s15_s13, %s15_s13 }
   0x8   :  { %p400_p3 = scmp.ne.s32.totalorder %s15_s13, %s399_s21  ;;  %p405_p5 = scmp.lt.s32.totalorder %s399_s21, %s399_s21 }
   0xa   :  { %p406_p6 = por %p405_p5, %p404_p4 }
   0xc   :  { %p407_p7 = pnand %p406_p6, %p400_p3 }
   0xe   :  { %410 = shalt.err (!%p407_p7)
}
   0xf   :  { %s414_s22 = smov 128   ;;  %s415_s23 = smov 8  }
  0x10   :  { %20 = dma.hbm_to_vmem [thread:$0]  %s547_s0, 2048, %s15_s13, [#allocation3], %s414_s22, %s414_s22, %s415_s23  }
  0x11   :  { %411 = dma.done.wait [#allocation3], 2048  }
  0x12   :  { %412 = vsyncadd [#allocation3], 4294965248  ;;  %v44_v0 = vld [vmem:[%s548_s1] sm:$0xff]  ;;  %v45_v1 = vld [vmem:[%s548_s1 + $0x8] sm:$0xff] }
  0x13   :  { %v46_v2 = vld [vmem:[%s548_s1 + $0x10] sm:$0xff]  ;;  %v338_v3 = vpack.c.bf16 %v45_v1, %v44_v0  ;;  %v47_v4 = vld [vmem:[%s548_s1 + $0x18] sm:$0xff]  ;;  %v48_v6 = vld [vmem:[%s548_s1 + $0x20] sm:$0xff] }
  0x14   :  { %v342_v5 = vpack.c.bf16 %v47_v4, %v46_v2  ;;  %v49_v7 = vld [vmem:[%s548_s1 + $0x28] sm:$0xff]  ;;  %v28_v9 = vld [vmem:[#allocation2] sm:$0xff]  ;;  %v50_v11 = vld [vmem:[%s548_s1 + $0x30] sm:$0xff] }
  0x15   :  { %339 = vmatprep.subr.bf16.mxu0 %v338_v3  ;;  %370 = vmatprep.subr.bf16.mxu1 %v338_v3  ;;  %v346_v8 = vpack.c.bf16 %v49_v7, %v48_v6  ;;  %v36_v10 = vld [vmem:[#allocation2 + $0x40] sm:$0xff]  ;;  %v51_v12 = vld [vmem:[%s548_s1 + $0x38] sm:$0xff]  ;;  %v53_v15 = vld [vmem:[%s548_s1 + $0x48] sm:$0xff] }
  0x16   :  { %341 = vmatpush3.bf16.msra.mxu0 %v338_v3  ;;  %378 = vmatpush3.bf16.msra.mxu1 %v338_v3  ;;  %v350_v13 = vpack.c.bf16 %v51_v12, %v50_v11  ;;  %v52_v14 = vld [vmem:[%s548_s1 + $0x40] sm:$0xff]  ;;  %v54_v17 = vld [vmem:[%s548_s1 + $0x50] sm:$0xff]  ;;  %v55_v18 = vld [vmem:[%s548_s1 + $0x58] sm:$0xff] }
  0x17   :  { %343 = vmatprep.subr.bf16.mxu0 %v342_v5  ;;  %371 = vmatprep.subr.bf16.mxu1 %v342_v5  ;;  %v354_v16 = vpack.c.bf16 %v53_v15, %v52_v14  ;;  %v358_v19 = vpack.c.bf16 %v55_v18, %v54_v17  ;;  %v56_v20 = vld [vmem:[%s548_s1 + $0x60] sm:$0xff]  ;;  %v57_v21 = vld [vmem:[%s548_s1 + $0x68] sm:$0xff]  ;;  %v58_v23 = vld [vmem:[%s548_s1 + $0x70] sm:$0xff] }
  0x18   :  { %314 = vmatprep.mubr.f32.mxu0 %v28_v9  ;;  %326 = vmatprep.mubr.f32.mxu1 %v36_v10  ;;  %v362_v22 = vpack.c.bf16 %v57_v21, %v56_v20  ;;  %v59_v24 = vld [vmem:[%s548_s1 + $0x78] sm:$0xff]  ;;  %v29_v26 = vld [vmem:[#allocation2 + $0x8] sm:$0xff]  ;;  %v30_v28 = vld [vmem:[#allocation2 + $0x10] sm:$0xff] }
  0x19   :  { %v366_v25 = vpack.c.bf16 %v59_v24, %v58_v23  ;;  %v37_v27 = vld [vmem:[#allocation2 + $0x48] sm:$0xff]  ;;  %v38_v29 = vld [vmem:[#allocation2 + $0x50] sm:$0xff]  ;;  %v31_v30 = vld [vmem:[#allocation2 + $0x18] sm:$0xff] }
  0x1a   :  { %345 = vmatpush3.bf16.msra.mxu0 %v342_v5  ;;  %379 = vmatpush3.bf16.msra.mxu1 %v342_v5  ;;  %v39_v31 = vld [vmem:[#allocation2 + $0x58] sm:$0xff]  ;;  %v32_v32 = vld [vmem:[#allocation2 + $0x20] sm:$0xff]  ;;  %v33_v34 = vld [vmem:[#allocation2 + $0x28] sm:$0xff] }
  0x1b   :  { %347 = vmatprep.subr.bf16.mxu0 %v346_v8  ;;  %372 = vmatprep.subr.bf16.mxu1 %v346_v8  ;;  %v40_v33 = vld [vmem:[#allocation2 + $0x60] sm:$0xff]  ;;  %v41_v35 = vld [vmem:[#allocation2 + $0x68] sm:$0xff]  ;;  %v34_v36 = vld [vmem:[#allocation2 + $0x30] sm:$0xff] }
  0x1c   :  { %v42_v37 = vld [vmem:[#allocation2 + $0x70] sm:$0xff]  ;;  %v35_v38 = vld [vmem:[#allocation2 + $0x38] sm:$0xff]  ;;  %v249_v40 = vld [vmem:[%s549_s2] ss:$0 sm:$0xff] }
  0x1d   :  { %v43_v39 = vld [vmem:[#allocation2 + $0x78] sm:$0xff] }
  0x1e   :  { %349 = vmatpush3.bf16.msra.mxu0 %v346_v8  ;;  %380 = vmatpush3.bf16.msra.mxu1 %v346_v8 }
  0x1f   :  { %351 = vmatprep.subr.bf16.mxu0 %v350_v13  ;;  %373 = vmatprep.subr.bf16.mxu1 %v350_v13 }
  0x22   :  { %353 = vmatpush3.bf16.msra.mxu0 %v350_v13  ;;  %381 = vmatpush3.bf16.msra.mxu1 %v350_v13 }
  0x23   :  { %355 = vmatprep.subr.bf16.mxu0 %v354_v16  ;;  %374 = vmatprep.subr.bf16.mxu1 %v354_v16 }
  0x26   :  { %357 = vmatpush3.bf16.msra.mxu0 %v354_v16  ;;  %382 = vmatpush3.bf16.msra.mxu1 %v354_v16 }
  0x27   :  { %359 = vmatprep.subr.bf16.mxu0 %v358_v19  ;;  %375 = vmatprep.subr.bf16.mxu1 %v358_v19 }
  0x2a   :  { %361 = vmatpush3.bf16.msra.mxu0 %v358_v19  ;;  %383 = vmatpush3.bf16.msra.mxu1 %v358_v19 }
  0x2b   :  { %363 = vmatprep.subr.bf16.mxu0 %v362_v22  ;;  %376 = vmatprep.subr.bf16.mxu1 %v362_v22 }
  0x2e   :  { %365 = vmatpush3.bf16.msra.mxu0 %v362_v22  ;;  %384 = vmatpush3.bf16.msra.mxu1 %v362_v22 }
  0x2f   :  { %367 = vmatprep.subr.bf16.mxu0 %v366_v25  ;;  %377 = vmatprep.subr.bf16.mxu1 %v366_v25 }
  0x32   :  { %369 = vmatpush3.bf16.msra.mxu0 %v366_v25  ;;  %385 = vmatpush3.bf16.msra.mxu1 %v366_v25 }
  0x35   :  { %315 = vmatmul.mubr.f32.vlgmr.msra.gmra.mrb[0].mxu0 %v29_v26  ;;  %327 = vmatmul.mubr.f32.vlgmr.msra.gmra.mrb[0].mxu1 %v37_v27 }
  0x36   :  { %317 = vmatprep.mubr.f32.mxu0 %v30_v28  ;;  %329 = vmatprep.mubr.f32.mxu1 %v38_v29 }
  0x39   :  { %318 = vmatmul.mubr.f32.gmra.mrb[2].mxu0 %v31_v30  ;;  %330 = vmatmul.mubr.f32.gmra.mrb[2].mxu1 %v39_v31 }
  0x3a   :  { %320 = vmatprep.mubr.f32.mxu0 %v32_v32  ;;  %332 = vmatprep.mubr.f32.mxu1 %v40_v33 }
  0x3d   :  { %321 = vmatmul.mubr.f32.gmra.mrb[4].mxu0 %v33_v34  ;;  %333 = vmatmul.mubr.f32.gmra.mrb[4].mxu1 %v41_v35 }
  0x3e   :  { %323 = vmatprep.mubr.f32.mxu0 %v34_v36  ;;  %335 = vmatprep.mubr.f32.mxu1 %v42_v37 }
  0x41   :  { %324 = vmatmul.mubr.f32.gmra.mrb[6].mxu0 %v35_v38  ;;  %336 = vmatmul.mubr.f32.gmra.mrb[6].mxu1 %v43_v39 }
 0x108   :  { %v316_v41 = vpop.f32.mrb[0].mxu0  ;;  %v328_v42 = vpop.f32.mrb[0].mxu1 }
 0x109   :  { %v139_v43 = vadd.f32 %v316_v41, %v249_v40  ;;  %v179_v44 = vadd.f32 %v328_v42, %v249_v40  ;;  %v133_v45 = vpop.f32.mrb[1].mxu0  ;;  %v173_v46 = vpop.f32.mrb[1].mxu1 }
 0x10a   :  { %v134_v47 = vadd.f32 %v249_v40, %v133_v45  ;;  %v174_v48 = vadd.f32 %v249_v40, %v173_v46 }
 0x10b   :  { %v213_v49 = vmax.f32 %v139_v43, 0.0  ;;  %v221_v50 = vmax.f32 %v179_v44, 0.0 }
 0x10c   :  { %v212_v51 = vmax.f32 %v134_v47, 0.0  ;;  %v220_v52 = vmax.f32 %v174_v48, 0.0  ;;  %v319_v53 = vpop.f32.mrb[2].mxu0  ;;  %v331_v54 = vpop.f32.mrb[2].mxu1 }
 0x10d   :  { %229 = vst [vmem:[%s550_s3 + $0x8] sm:$0xff] %v213_v49  ;;  %237 = vst [vmem:[%s550_s3 + $0x48] sm:$0xff] %v221_v50  ;;  %v149_v55 = vadd.f32 %v319_v53, %v249_v40  ;;  %v189_v56 = vadd.f32 %v331_v54, %v249_v40  ;;  %v143_v57 = vpop.f32.mrb[3].mxu0  ;;  %v183_v58 = vpop.f32.mrb[3].mxu1 }
 0x10e   :  { %228 = vst [vmem:[%s550_s3] sm:$0xff] %v212_v51  ;;  %236 = vst [vmem:[%s550_s3 + $0x40] sm:$0xff] %v220_v52  ;;  %v144_v59 = vadd.f32 %v249_v40, %v143_v57  ;;  %v184_v60 = vadd.f32 %v249_v40, %v183_v58 }
 0x10f   :  { %v215_v61 = vmax.f32 %v149_v55, 0.0  ;;  %v223_v62 = vmax.f32 %v189_v56, 0.0 }
 0x110   :  { %v214_v63 = vmax.f32 %v144_v59, 0.0  ;;  %v222_v0 = vmax.f32 %v184_v60, 0.0  ;;  %v322_v1 = vpop.f32.mrb[4].mxu0  ;;  %v334_v2 = vpop.f32.mrb[4].mxu1 }
 0x111   :  { %231 = vst [vmem:[%s550_s3 + $0x18] sm:$0xff] %v215_v61  ;;  %239 = vst [vmem:[%s550_s3 + $0x58] sm:$0xff] %v223_v62  ;;  %v159_v3 = vadd.f32 %v322_v1, %v249_v40  ;;  %v199_v4 = vadd.f32 %v334_v2, %v249_v40  ;;  %v153_v5 = vpop.f32.mrb[5].mxu0  ;;  %v193_v6 = vpop.f32.mrb[5].mxu1 }
 0x112   :  { %230 = vst [vmem:[%s550_s3 + $0x10] sm:$0xff] %v214_v63  ;;  %238 = vst [vmem:[%s550_s3 + $0x50] sm:$0xff] %v222_v0  ;;  %v154_v7 = vadd.f32 %v249_v40, %v153_v5  ;;  %v194_v8 = vadd.f32 %v249_v40, %v193_v6 }
 0x113   :  { %v217_v9 = vmax.f32 %v159_v3, 0.0  ;;  %v225_v10 = vmax.f32 %v199_v4, 0.0 }
 0x114   :  { %v216_v11 = vmax.f32 %v154_v7, 0.0  ;;  %v224_v12 = vmax.f32 %v194_v8, 0.0  ;;  %v325_v13 = vpop.f32.mrb[6].mxu0  ;;  %v337_v14 = vpop.f32.mrb[6].mxu1 }
 0x115   :  { %233 = vst [vmem:[%s550_s3 + $0x28] sm:$0xff] %v217_v9  ;;  %241 = vst [vmem:[%s550_s3 + $0x68] sm:$0xff] %v225_v10  ;;  %v169_v15 = vadd.f32 %v325_v13, %v249_v40  ;;  %v209_v16 = vadd.f32 %v337_v14, %v249_v40  ;;  %v163_v17 = vpop.f32.mrb[7].mxu0  ;;  %v203_v18 = vpop.f32.mrb[7].mxu1 }
 0x116   :  { %232 = vst [vmem:[%s550_s3 + $0x20] sm:$0xff] %v216_v11  ;;  %240 = vst [vmem:[%s550_s3 + $0x60] sm:$0xff] %v224_v12  ;;  %v164_v19 = vadd.f32 %v249_v40, %v163_v17  ;;  %v204_v20 = vadd.f32 %v249_v40, %v203_v18 }
 0x117   :  { %v219_v21 = vmax.f32 %v169_v15, 0.0  ;;  %v227_v22 = vmax.f32 %v209_v16, 0.0 }
 0x118   :  { %v218_v23 = vmax.f32 %v164_v19, 0.0  ;;  %v226_v24 = vmax.f32 %v204_v20, 0.0 }
 0x119   :  { %235 = vst [vmem:[%s550_s3 + $0x38] sm:$0xff] %v219_v21  ;;  %243 = vst [vmem:[%s550_s3 + $0x78] sm:$0xff] %v227_v22 }
 0x11a   :  { %234 = vst [vmem:[%s550_s3 + $0x30] sm:$0xff] %v218_v23  ;;  %242 = vst [vmem:[%s550_s3 + $0x70] sm:$0xff] %v226_v24 }
 0x11b   :  { %248 = vsyncpa [#allocation3], 1 }

// kernel: gconv_forward.6
= control target key start
LH: loop header
LB: loop body
LE: loop exit
PB: predicated region body
PF: predicated region fallthrough
CT: control target
= control target key end

     0   :  { %s503_s1 = inlined_call_operand.vmem [shape: f32[128,128], index: 1, kind: input, shape index: {}]   ;;  %s504_s0 = inlined_call_operand.vmem [shape: f32[128,128], index: 0, kind: input, shape index: {}]   ;;  %s505_s2 = inlined_call_operand.vmem [shape: f32[128,128], index: 2, kind: output, shape index: {}]  }
   0x1   :  { %v27_v0 = vld [vmem:[%s503_s1] sm:$0xff]  ;;  %v28_v1 = vld [vmem:[%s503_s1 + $0x8] sm:$0xff]  ;;  %v29_v2 = vld [vmem:[%s503_s1 + $0x10] sm:$0xff] }
   0x2   :  { %v296_v3 = vpack.c.bf16 %v28_v1, %v27_v0  ;;  %v30_v4 = vld [vmem:[%s503_s1 + $0x18] sm:$0xff]  ;;  %v31_v6 = vld [vmem:[%s503_s1 + $0x20] sm:$0xff]  ;;  %v32_v7 = vld [vmem:[%s503_s1 + $0x28] sm:$0xff] }
   0x3   :  { %v300_v5 = vpack.c.bf16 %v30_v4, %v29_v2  ;;  %v304_v8 = vpack.c.bf16 %v32_v7, %v31_v6  ;;  %v11_v9 = vld [vmem:[%s504_s0] sm:$0xff]  ;;  %v33_v11 = vld [vmem:[%s503_s1 + $0x30] sm:$0xff]  ;;  %v34_v12 = vld [vmem:[%s503_s1 + $0x38] sm:$0xff] }
   0x4   :  { %297 = vmatprep.subr.bf16.mxu0 %v296_v3  ;;  %328 = vmatprep.subr.bf16.mxu1 %v296_v3  ;;  %v19_v10 = vld [vmem:[%s504_s0 + $0x40] sm:$0xff]  ;;  %v308_v13 = vpack.c.bf16 %v34_v12, %v33_v11  ;;  %v36_v15 = vld [vmem:[%s503_s1 + $0x48] sm:$0xff]  ;;  %v37_v17 = vld [vmem:[%s503_s1 + $0x50] sm:$0xff] }
   0x5   :  { %299 = vmatpush3.bf16.msra.mxu0 %v296_v3  ;;  %336 = vmatpush3.bf16.msra.mxu1 %v296_v3  ;;  %v35_v14 = vld [vmem:[%s503_s1 + $0x40] sm:$0xff]  ;;  %v38_v18 = vld [vmem:[%s503_s1 + $0x58] sm:$0xff]  ;;  %v40_v21 = vld [vmem:[%s503_s1 + $0x68] sm:$0xff] }
   0x6   :  { %301 = vmatprep.subr.bf16.mxu0 %v300_v5  ;;  %329 = vmatprep.subr.bf16.mxu1 %v300_v5  ;;  %v312_v16 = vpack.c.bf16 %v36_v15, %v35_v14  ;;  %v316_v19 = vpack.c.bf16 %v38_v18, %v37_v17  ;;  %v39_v20 = vld [vmem:[%s503_s1 + $0x60] sm:$0xff]  ;;  %v41_v23 = vld [vmem:[%s503_s1 + $0x70] sm:$0xff]  ;;  %v42_v24 = vld [vmem:[%s503_s1 + $0x78] sm:$0xff] }
   0x7   :  { %272 = vmatprep.mubr.f32.mxu0 %v11_v9  ;;  %284 = vmatprep.mubr.f32.mxu1 %v19_v10  ;;  %v320_v22 = vpack.c.bf16 %v40_v21, %v39_v20  ;;  %v324_v25 = vpack.c.bf16 %v42_v24, %v41_v23  ;;  %v12_v26 = vld [vmem:[%s504_s0 + $0x8] sm:$0xff]  ;;  %v13_v28 = vld [vmem:[%s504_s0 + $0x10] sm:$0xff]  ;;  %v14_v30 = vld [vmem:[%s504_s0 + $0x18] sm:$0xff] }
   0x8   :  { %v20_v27 = vld [vmem:[%s504_s0 + $0x48] sm:$0xff]  ;;  %v21_v29 = vld [vmem:[%s504_s0 + $0x50] sm:$0xff]  ;;  %v22_v31 = vld [vmem:[%s504_s0 + $0x58] sm:$0xff] }
   0x9   :  { %303 = vmatpush3.bf16.msra.mxu0 %v300_v5  ;;  %337 = vmatpush3.bf16.msra.mxu1 %v300_v5  ;;  %v15_v32 = vld [vmem:[%s504_s0 + $0x20] sm:$0xff]  ;;  %v16_v34 = vld [vmem:[%s504_s0 + $0x28] sm:$0xff]  ;;  %v17_v36 = vld [vmem:[%s504_s0 + $0x30] sm:$0xff] }
   0xa   :  { %305 = vmatprep.subr.bf16.mxu0 %v304_v8  ;;  %330 = vmatprep.subr.bf16.mxu1 %v304_v8  ;;  %v23_v33 = vld [vmem:[%s504_s0 + $0x60] sm:$0xff]  ;;  %v24_v35 = vld [vmem:[%s504_s0 + $0x68] sm:$0xff]  ;;  %v25_v37 = vld [vmem:[%s504_s0 + $0x70] sm:$0xff] }
   0xb   :  { %v18_v38 = vld [vmem:[%s504_s0 + $0x38] sm:$0xff] }
   0xc   :  { %v26_v39 = vld [vmem:[%s504_s0 + $0x78] sm:$0xff] }
   0xd   :  { %307 = vmatpush3.bf16.msra.mxu0 %v304_v8  ;;  %338 = vmatpush3.bf16.msra.mxu1 %v304_v8 }
   0xe   :  { %309 = vmatprep.subr.bf16.mxu0 %v308_v13  ;;  %331 = vmatprep.subr.bf16.mxu1 %v308_v13 }
  0x11   :  { %311 = vmatpush3.bf16.msra.mxu0 %v308_v13  ;;  %339 = vmatpush3.bf16.msra.mxu1 %v308_v13 }
  0x12   :  { %313 = vmatprep.subr.bf16.mxu0 %v312_v16  ;;  %332 = vmatprep.subr.bf16.mxu1 %v312_v16 }
  0x15   :  { %315 = vmatpush3.bf16.msra.mxu0 %v312_v16  ;;  %340 = vmatpush3.bf16.msra.mxu1 %v312_v16 }
  0x16   :  { %317 = vmatprep.subr.bf16.mxu0 %v316_v19  ;;  %333 = vmatprep.subr.bf16.mxu1 %v316_v19 }
  0x19   :  { %319 = vmatpush3.bf16.msra.mxu0 %v316_v19  ;;  %341 = vmatpush3.bf16.msra.mxu1 %v316_v19 }
  0x1a   :  { %321 = vmatprep.subr.bf16.mxu0 %v320_v22  ;;  %334 = vmatprep.subr.bf16.mxu1 %v320_v22 }
  0x1d   :  { %323 = vmatpush3.bf16.msra.mxu0 %v320_v22  ;;  %342 = vmatpush3.bf16.msra.mxu1 %v320_v22 }
  0x1e   :  { %325 = vmatprep.subr.bf16.mxu0 %v324_v25  ;;  %335 = vmatprep.subr.bf16.mxu1 %v324_v25 }
  0x21   :  { %327 = vmatpush3.bf16.msra.mxu0 %v324_v25  ;;  %343 = vmatpush3.bf16.msra.mxu1 %v324_v25 }
  0x24   :  { %273 = vmatmul.mubr.f32.vlgmr.msra.gmra.mrb[0].mxu0 %v12_v26  ;;  %285 = vmatmul.mubr.f32.vlgmr.msra.gmra.mrb[0].mxu1 %v20_v27 }
  0x25   :  { %275 = vmatprep.mubr.f32.mxu0 %v13_v28  ;;  %287 = vmatprep.mubr.f32.mxu1 %v21_v29 }
  0x28   :  { %276 = vmatmul.mubr.f32.gmra.mrb[2].mxu0 %v14_v30  ;;  %288 = vmatmul.mubr.f32.gmra.mrb[2].mxu1 %v22_v31 }
  0x29   :  { %278 = vmatprep.mubr.f32.mxu0 %v15_v32  ;;  %290 = vmatprep.mubr.f32.mxu1 %v23_v33 }
  0x2c   :  { %279 = vmatmul.mubr.f32.gmra.mrb[4].mxu0 %v16_v34  ;;  %291 = vmatmul.mubr.f32.gmra.mrb[4].mxu1 %v24_v35 }
  0x2d   :  { %281 = vmatprep.mubr.f32.mxu0 %v17_v36  ;;  %293 = vmatprep.mubr.f32.mxu1 %v25_v37 }
  0x30   :  { %282 = vmatmul.mubr.f32.gmra.mrb[6].mxu0 %v18_v38  ;;  %294 = vmatmul.mubr.f32.gmra.mrb[6].mxu1 %v26_v39 }
  0xf7   :  { %v274_v40 = vpop.f32.mrb[0].mxu0  ;;  %v286_v41 = vpop.f32.mrb[0].mxu1 }
  0xf8   :  { %189 = vst [vmem:[%s505_s2 + $0x8] sm:$0xff] %v274_v40  ;;  %197 = vst [vmem:[%s505_s2 + $0x48] sm:$0xff] %v286_v41  ;;  %v109_v42 = vpop.f32.mrb[1].mxu0  ;;  %v149_v43 = vpop.f32.mrb[1].mxu1 }
  0xf9   :  { %188 = vst [vmem:[%s505_s2] sm:$0xff] %v109_v42  ;;  %196 = vst [vmem:[%s505_s2 + $0x40] sm:$0xff] %v149_v43 }
  0xfb   :  { %v277_v44 = vpop.f32.mrb[2].mxu0  ;;  %v289_v45 = vpop.f32.mrb[2].mxu1 }
  0xfc   :  { %191 = vst [vmem:[%s505_s2 + $0x18] sm:$0xff] %v277_v44  ;;  %199 = vst [vmem:[%s505_s2 + $0x58] sm:$0xff] %v289_v45  ;;  %v119_v46 = vpop.f32.mrb[3].mxu0  ;;  %v159_v47 = vpop.f32.mrb[3].mxu1 }
  0xfd   :  { %190 = vst [vmem:[%s505_s2 + $0x10] sm:$0xff] %v119_v46  ;;  %198 = vst [vmem:[%s505_s2 + $0x50] sm:$0xff] %v159_v47 }
  0xff   :  { %v280_v48 = vpop.f32.mrb[4].mxu0  ;;  %v292_v49 = vpop.f32.mrb[4].mxu1 }
 0x100   :  { %193 = vst [vmem:[%s505_s2 + $0x28] sm:$0xff] %v280_v48  ;;  %201 = vst [vmem:[%s505_s2 + $0x68] sm:$0xff] %v292_v49  ;;  %v129_v50 = vpop.f32.mrb[5].mxu0  ;;  %v169_v51 = vpop.f32.mrb[5].mxu1 }
 0x101   :  { %192 = vst [vmem:[%s505_s2 + $0x20] sm:$0xff] %v129_v50  ;;  %200 = vst [vmem:[%s505_s2 + $0x60] sm:$0xff] %v169_v51 }
 0x103   :  { %v283_v52 = vpop.f32.mrb[6].mxu0  ;;  %v295_v53 = vpop.f32.mrb[6].mxu1 }
 0x104   :  { %195 = vst [vmem:[%s505_s2 + $0x38] sm:$0xff] %v283_v52  ;;  %203 = vst [vmem:[%s505_s2 + $0x78] sm:$0xff] %v295_v53  ;;  %v139_v54 = vpop.f32.mrb[7].mxu0  ;;  %v179_v55 = vpop.f32.mrb[7].mxu1 }
 0x105   :  { %194 = vst [vmem:[%s505_s2 + $0x30] sm:$0xff] %v139_v54  ;;  %202 = vst [vmem:[%s505_s2 + $0x70] sm:$0xff] %v179_v55 }

// kernel: gconv_forward.9
= control target key start
LH: loop header
LB: loop body
LE: loop exit
PB: predicated region body
PF: predicated region fallthrough
CT: control target
= control target key end

     0   :  { %s538_s1 = inlined_call_operand.vmem [shape: f32[128,128], index: 1, kind: input, shape index: {}]   ;;  %s539_s0 = inlined_call_operand.vmem [shape: f32[128,128], index: 0, kind: input, shape index: {}]   ;;  %s540_s2 = inlined_call_operand.vmem [shape: f32[1,128], index: 2, kind: input, shape index: {}]   ;;  %s541_s3 = inlined_call_operand.vmem [shape: f32[128,128], index: 3, kind: output, shape index: {}]  }
   0x1   :  { %v30_v0 = vld [vmem:[%s538_s1] sm:$0xff]  ;;  %v31_v1 = vld [vmem:[%s538_s1 + $0x8] sm:$0xff]  ;;  %v32_v2 = vld [vmem:[%s538_s1 + $0x10] sm:$0xff] }
   0x2   :  { %v323_v3 = vpack.c.bf16 %v31_v1, %v30_v0  ;;  %v33_v4 = vld [vmem:[%s538_s1 + $0x18] sm:$0xff]  ;;  %v34_v6 = vld [vmem:[%s538_s1 + $0x20] sm:$0xff]  ;;  %v35_v7 = vld [vmem:[%s538_s1 + $0x28] sm:$0xff] }
   0x3   :  { %v327_v5 = vpack.c.bf16 %v33_v4, %v32_v2  ;;  %v331_v8 = vpack.c.bf16 %v35_v7, %v34_v6  ;;  %v14_v9 = vld [vmem:[%s539_s0] sm:$0xff]  ;;  %v36_v11 = vld [vmem:[%s538_s1 + $0x30] sm:$0xff]  ;;  %v37_v12 = vld [vmem:[%s538_s1 + $0x38] sm:$0xff] }
   0x4   :  { %324 = vmatprep.subr.bf16.mxu0 %v323_v3  ;;  %355 = vmatprep.subr.bf16.mxu1 %v323_v3  ;;  %v22_v10 = vld [vmem:[%s539_s0 + $0x40] sm:$0xff]  ;;  %v335_v13 = vpack.c.bf16 %v37_v12, %v36_v11  ;;  %v39_v15 = vld [vmem:[%s538_s1 + $0x48] sm:$0xff]  ;;  %v40_v17 = vld [vmem:[%s538_s1 + $0x50] sm:$0xff] }
   0x5   :  { %326 = vmatpush3.bf16.msra.mxu0 %v323_v3  ;;  %363 = vmatpush3.bf16.msra.mxu1 %v323_v3  ;;  %v38_v14 = vld [vmem:[%s538_s1 + $0x40] sm:$0xff]  ;;  %v41_v18 = vld [vmem:[%s538_s1 + $0x58] sm:$0xff]  ;;  %v43_v21 = vld [vmem:[%s538_s1 + $0x68] sm:$0xff] }
   0x6   :  { %328 = vmatprep.subr.bf16.mxu0 %v327_v5  ;;  %356 = vmatprep.subr.bf16.mxu1 %v327_v5  ;;  %v339_v16 = vpack.c.bf16 %v39_v15, %v38_v14  ;;  %v343_v19 = vpack.c.bf16 %v41_v18, %v40_v17  ;;  %v42_v20 = vld [vmem:[%s538_s1 + $0x60] sm:$0xff]  ;;  %v44_v23 = vld [vmem:[%s538_s1 + $0x70] sm:$0xff]  ;;  %v45_v24 = vld [vmem:[%s538_s1 + $0x78] sm:$0xff] }
   0x7   :  { %299 = vmatprep.mubr.f32.mxu0 %v14_v9  ;;  %311 = vmatprep.mubr.f32.mxu1 %v22_v10  ;;  %v347_v22 = vpack.c.bf16 %v43_v21, %v42_v20  ;;  %v351_v25 = vpack.c.bf16 %v45_v24, %v44_v23  ;;  %v15_v26 = vld [vmem:[%s539_s0 + $0x8] sm:$0xff]  ;;  %v16_v28 = vld [vmem:[%s539_s0 + $0x10] sm:$0xff]  ;;  %v17_v30 = vld [vmem:[%s539_s0 + $0x18] sm:$0xff] }
   0x8   :  { %v23_v27 = vld [vmem:[%s539_s0 + $0x48] sm:$0xff]  ;;  %v24_v29 = vld [vmem:[%s539_s0 + $0x50] sm:$0xff]  ;;  %v25_v31 = vld [vmem:[%s539_s0 + $0x58] sm:$0xff] }
   0x9   :  { %330 = vmatpush3.bf16.msra.mxu0 %v327_v5  ;;  %364 = vmatpush3.bf16.msra.mxu1 %v327_v5  ;;  %v18_v32 = vld [vmem:[%s539_s0 + $0x20] sm:$0xff]  ;;  %v19_v34 = vld [vmem:[%s539_s0 + $0x28] sm:$0xff]  ;;  %v20_v36 = vld [vmem:[%s539_s0 + $0x30] sm:$0xff] }
   0xa   :  { %332 = vmatprep.subr.bf16.mxu0 %v331_v8  ;;  %357 = vmatprep.subr.bf16.mxu1 %v331_v8  ;;  %v26_v33 = vld [vmem:[%s539_s0 + $0x60] sm:$0xff]  ;;  %v27_v35 = vld [vmem:[%s539_s0 + $0x68] sm:$0xff]  ;;  %v28_v37 = vld [vmem:[%s539_s0 + $0x70] sm:$0xff] }
   0xb   :  { %v21_v38 = vld [vmem:[%s539_s0 + $0x38] sm:$0xff]  ;;  %v234_v40 = vld [vmem:[%s540_s2] ss:$0 sm:$0xff] }
   0xc   :  { %v29_v39 = vld [vmem:[%s539_s0 + $0x78] sm:$0xff] }
   0xd   :  { %334 = vmatpush3.bf16.msra.mxu0 %v331_v8  ;;  %365 = vmatpush3.bf16.msra.mxu1 %v331_v8 }
   0xe   :  { %336 = vmatprep.subr.bf16.mxu0 %v335_v13  ;;  %358 = vmatprep.subr.bf16.mxu1 %v335_v13 }
  0x11   :  { %338 = vmatpush3.bf16.msra.mxu0 %v335_v13  ;;  %366 = vmatpush3.bf16.msra.mxu1 %v335_v13 }
  0x12   :  { %340 = vmatprep.subr.bf16.mxu0 %v339_v16  ;;  %359 = vmatprep.subr.bf16.mxu1 %v339_v16 }
  0x15   :  { %342 = vmatpush3.bf16.msra.mxu0 %v339_v16  ;;  %367 = vmatpush3.bf16.msra.mxu1 %v339_v16 }
  0x16   :  { %344 = vmatprep.subr.bf16.mxu0 %v343_v19  ;;  %360 = vmatprep.subr.bf16.mxu1 %v343_v19 }
  0x19   :  { %346 = vmatpush3.bf16.msra.mxu0 %v343_v19  ;;  %368 = vmatpush3.bf16.msra.mxu1 %v343_v19 }
  0x1a   :  { %348 = vmatprep.subr.bf16.mxu0 %v347_v22  ;;  %361 = vmatprep.subr.bf16.mxu1 %v347_v22 }
  0x1d   :  { %350 = vmatpush3.bf16.msra.mxu0 %v347_v22  ;;  %369 = vmatpush3.bf16.msra.mxu1 %v347_v22 }
  0x1e   :  { %352 = vmatprep.subr.bf16.mxu0 %v351_v25  ;;  %362 = vmatprep.subr.bf16.mxu1 %v351_v25 }
  0x21   :  { %354 = vmatpush3.bf16.msra.mxu0 %v351_v25  ;;  %370 = vmatpush3.bf16.msra.mxu1 %v351_v25 }
  0x24   :  { %300 = vmatmul.mubr.f32.vlgmr.msra.gmra.mrb[0].mxu0 %v15_v26  ;;  %312 = vmatmul.mubr.f32.vlgmr.msra.gmra.mrb[0].mxu1 %v23_v27 }
  0x25   :  { %302 = vmatprep.mubr.f32.mxu0 %v16_v28  ;;  %314 = vmatprep.mubr.f32.mxu1 %v24_v29 }
  0x28   :  { %303 = vmatmul.mubr.f32.gmra.mrb[2].mxu0 %v17_v30  ;;  %315 = vmatmul.mubr.f32.gmra.mrb[2].mxu1 %v25_v31 }
  0x29   :  { %305 = vmatprep.mubr.f32.mxu0 %v18_v32  ;;  %317 = vmatprep.mubr.f32.mxu1 %v26_v33 }
  0x2c   :  { %306 = vmatmul.mubr.f32.gmra.mrb[4].mxu0 %v19_v34  ;;  %318 = vmatmul.mubr.f32.gmra.mrb[4].mxu1 %v27_v35 }
  0x2d   :  { %308 = vmatprep.mubr.f32.mxu0 %v20_v36  ;;  %320 = vmatprep.mubr.f32.mxu1 %v28_v37 }
  0x30   :  { %309 = vmatmul.mubr.f32.gmra.mrb[6].mxu0 %v21_v38  ;;  %321 = vmatmul.mubr.f32.gmra.mrb[6].mxu1 %v29_v39 }
  0xf7   :  { %v301_v41 = vpop.f32.mrb[0].mxu0  ;;  %v313_v42 = vpop.f32.mrb[0].mxu1 }
  0xf8   :  { %v125_v43 = vadd.f32 %v301_v41, %v234_v40  ;;  %v165_v44 = vadd.f32 %v313_v42, %v234_v40  ;;  %v119_v45 = vpop.f32.mrb[1].mxu0  ;;  %v159_v46 = vpop.f32.mrb[1].mxu1 }
  0xf9   :  { %v120_v47 = vadd.f32 %v234_v40, %v119_v45  ;;  %v160_v48 = vadd.f32 %v234_v40, %v159_v46 }
  0xfa   :  { %v199_v49 = vmax.f32 %v125_v43, 0.0  ;;  %v207_v50 = vmax.f32 %v165_v44, 0.0 }
  0xfb   :  { %v198_v51 = vmax.f32 %v120_v47, 0.0  ;;  %v206_v52 = vmax.f32 %v160_v48, 0.0  ;;  %v304_v53 = vpop.f32.mrb[2].mxu0  ;;  %v316_v54 = vpop.f32.mrb[2].mxu1 }
  0xfc   :  { %215 = vst [vmem:[%s541_s3 + $0x8] sm:$0xff] %v199_v49  ;;  %223 = vst [vmem:[%s541_s3 + $0x48] sm:$0xff] %v207_v50  ;;  %v135_v55 = vadd.f32 %v304_v53, %v234_v40  ;;  %v175_v56 = vadd.f32 %v316_v54, %v234_v40  ;;  %v129_v57 = vpop.f32.mrb[3].mxu0  ;;  %v169_v58 = vpop.f32.mrb[3].mxu1 }
  0xfd   :  { %214 = vst [vmem:[%s541_s3] sm:$0xff] %v198_v51  ;;  %222 = vst [vmem:[%s541_s3 + $0x40] sm:$0xff] %v206_v52  ;;  %v130_v59 = vadd.f32 %v234_v40, %v129_v57  ;;  %v170_v60 = vadd.f32 %v234_v40, %v169_v58 }
  0xfe   :  { %v201_v61 = vmax.f32 %v135_v55, 0.0  ;;  %v209_v62 = vmax.f32 %v175_v56, 0.0 }
  0xff   :  { %v200_v63 = vmax.f32 %v130_v59, 0.0  ;;  %v208_v0 = vmax.f32 %v170_v60, 0.0  ;;  %v307_v1 = vpop.f32.mrb[4].mxu0  ;;  %v319_v2 = vpop.f32.mrb[4].mxu1 }
 0x100   :  { %217 = vst [vmem:[%s541_s3 + $0x18] sm:$0xff] %v201_v61  ;;  %225 = vst [vmem:[%s541_s3 + $0x58] sm:$0xff] %v209_v62  ;;  %v145_v3 = vadd.f32 %v307_v1, %v234_v40  ;;  %v185_v4 = vadd.f32 %v319_v2, %v234_v40  ;;  %v139_v5 = vpop.f32.mrb[5].mxu0  ;;  %v179_v6 = vpop.f32.mrb[5].mxu1 }
 0x101   :  { %216 = vst [vmem:[%s541_s3 + $0x10] sm:$0xff] %v200_v63  ;;  %224 = vst [vmem:[%s541_s3 + $0x50] sm:$0xff] %v208_v0  ;;  %v140_v7 = vadd.f32 %v234_v40, %v139_v5  ;;  %v180_v8 = vadd.f32 %v234_v40, %v179_v6 }
 0x102   :  { %v203_v9 = vmax.f32 %v145_v3, 0.0  ;;  %v211_v10 = vmax.f32 %v185_v4, 0.0 }
 0x103   :  { %v202_v11 = vmax.f32 %v140_v7, 0.0  ;;  %v210_v12 = vmax.f32 %v180_v8, 0.0  ;;  %v310_v13 = vpop.f32.mrb[6].mxu0  ;;  %v322_v14 = vpop.f32.mrb[6].mxu1 }
 0x104   :  { %219 = vst [vmem:[%s541_s3 + $0x28] sm:$0xff] %v203_v9  ;;  %227 = vst [vmem:[%s541_s3 + $0x68] sm:$0xff] %v211_v10  ;;  %v155_v15 = vadd.f32 %v310_v13, %v234_v40  ;;  %v195_v16 = vadd.f32 %v322_v14, %v234_v40  ;;  %v149_v17 = vpop.f32.mrb[7].mxu0  ;;  %v189_v18 = vpop.f32.mrb[7].mxu1 }
 0x105   :  { %218 = vst [vmem:[%s541_s3 + $0x20] sm:$0xff] %v202_v11  ;;  %226 = vst [vmem:[%s541_s3 + $0x60] sm:$0xff] %v210_v12  ;;  %v150_v19 = vadd.f32 %v234_v40, %v149_v17  ;;  %v190_v20 = vadd.f32 %v234_v40, %v189_v18 }
 0x106   :  { %v205_v21 = vmax.f32 %v155_v15, 0.0  ;;  %v213_v22 = vmax.f32 %v195_v16, 0.0 }
 0x107   :  { %v204_v23 = vmax.f32 %v150_v19, 0.0  ;;  %v212_v24 = vmax.f32 %v190_v20, 0.0 }
 0x108   :  { %221 = vst [vmem:[%s541_s3 + $0x38] sm:$0xff] %v205_v21  ;;  %229 = vst [vmem:[%s541_s3 + $0x78] sm:$0xff] %v213_v22 }
 0x109   :  { %220 = vst [vmem:[%s541_s3 + $0x30] sm:$0xff] %v204_v23  ;;  %228 = vst [vmem:[%s541_s3 + $0x70] sm:$0xff] %v212_v24 }

// kernel: gconv_forward.11
= control target key start
LH: loop header
LB: loop body
LE: loop exit
PB: predicated region body
PF: predicated region fallthrough
CT: control target
= control target key end

     0   :  { %s522_s1 = inlined_call_operand.vmem [shape: f32[128,128], index: 1, kind: input, shape index: {}]   ;;  %s523_s0 = inlined_call_operand.vmem [shape: f32[128,128], index: 0, kind: input, shape index: {}]   ;;  %s524_s2 = inlined_call_operand.vmem [shape: f32[1,128], index: 2, kind: input, shape index: {}]   ;;  %s525_s3 = inlined_call_operand.vmem [shape: f32[128,128], index: 3, kind: output, shape index: {}]  }
   0x1   :  { %v30_v0 = vld [vmem:[%s522_s1] sm:$0xff]  ;;  %v31_v1 = vld [vmem:[%s522_s1 + $0x8] sm:$0xff]  ;;  %v32_v2 = vld [vmem:[%s522_s1 + $0x10] sm:$0xff] }
   0x2   :  { %v307_v3 = vpack.c.bf16 %v31_v1, %v30_v0  ;;  %v33_v4 = vld [vmem:[%s522_s1 + $0x18] sm:$0xff]  ;;  %v34_v6 = vld [vmem:[%s522_s1 + $0x20] sm:$0xff]  ;;  %v35_v7 = vld [vmem:[%s522_s1 + $0x28] sm:$0xff] }
   0x3   :  { %v311_v5 = vpack.c.bf16 %v33_v4, %v32_v2  ;;  %v315_v8 = vpack.c.bf16 %v35_v7, %v34_v6  ;;  %v14_v9 = vld [vmem:[%s523_s0] sm:$0xff]  ;;  %v36_v11 = vld [vmem:[%s522_s1 + $0x30] sm:$0xff]  ;;  %v37_v12 = vld [vmem:[%s522_s1 + $0x38] sm:$0xff] }
   0x4   :  { %308 = vmatprep.subr.bf16.mxu0 %v307_v3  ;;  %339 = vmatprep.subr.bf16.mxu1 %v307_v3  ;;  %v22_v10 = vld [vmem:[%s523_s0 + $0x40] sm:$0xff]  ;;  %v319_v13 = vpack.c.bf16 %v37_v12, %v36_v11  ;;  %v39_v15 = vld [vmem:[%s522_s1 + $0x48] sm:$0xff]  ;;  %v40_v17 = vld [vmem:[%s522_s1 + $0x50] sm:$0xff] }
   0x5   :  { %310 = vmatpush3.bf16.msra.mxu0 %v307_v3  ;;  %347 = vmatpush3.bf16.msra.mxu1 %v307_v3  ;;  %v38_v14 = vld [vmem:[%s522_s1 + $0x40] sm:$0xff]  ;;  %v41_v18 = vld [vmem:[%s522_s1 + $0x58] sm:$0xff]  ;;  %v43_v21 = vld [vmem:[%s522_s1 + $0x68] sm:$0xff] }
   0x6   :  { %312 = vmatprep.subr.bf16.mxu0 %v311_v5  ;;  %340 = vmatprep.subr.bf16.mxu1 %v311_v5  ;;  %v323_v16 = vpack.c.bf16 %v39_v15, %v38_v14  ;;  %v327_v19 = vpack.c.bf16 %v41_v18, %v40_v17  ;;  %v42_v20 = vld [vmem:[%s522_s1 + $0x60] sm:$0xff]  ;;  %v44_v23 = vld [vmem:[%s522_s1 + $0x70] sm:$0xff]  ;;  %v45_v24 = vld [vmem:[%s522_s1 + $0x78] sm:$0xff] }
   0x7   :  { %283 = vmatprep.mubr.f32.mxu0 %v14_v9  ;;  %295 = vmatprep.mubr.f32.mxu1 %v22_v10  ;;  %v331_v22 = vpack.c.bf16 %v43_v21, %v42_v20  ;;  %v335_v25 = vpack.c.bf16 %v45_v24, %v44_v23  ;;  %v15_v26 = vld [vmem:[%s523_s0 + $0x8] sm:$0xff]  ;;  %v16_v28 = vld [vmem:[%s523_s0 + $0x10] sm:$0xff]  ;;  %v17_v30 = vld [vmem:[%s523_s0 + $0x18] sm:$0xff] }
   0x8   :  { %v23_v27 = vld [vmem:[%s523_s0 + $0x48] sm:$0xff]  ;;  %v24_v29 = vld [vmem:[%s523_s0 + $0x50] sm:$0xff]  ;;  %v25_v31 = vld [vmem:[%s523_s0 + $0x58] sm:$0xff] }
   0x9   :  { %314 = vmatpush3.bf16.msra.mxu0 %v311_v5  ;;  %348 = vmatpush3.bf16.msra.mxu1 %v311_v5  ;;  %v18_v32 = vld [vmem:[%s523_s0 + $0x20] sm:$0xff]  ;;  %v19_v34 = vld [vmem:[%s523_s0 + $0x28] sm:$0xff]  ;;  %v20_v36 = vld [vmem:[%s523_s0 + $0x30] sm:$0xff] }
   0xa   :  { %316 = vmatprep.subr.bf16.mxu0 %v315_v8  ;;  %341 = vmatprep.subr.bf16.mxu1 %v315_v8  ;;  %v26_v33 = vld [vmem:[%s523_s0 + $0x60] sm:$0xff]  ;;  %v27_v35 = vld [vmem:[%s523_s0 + $0x68] sm:$0xff]  ;;  %v28_v37 = vld [vmem:[%s523_s0 + $0x70] sm:$0xff] }
   0xb   :  { %v21_v38 = vld [vmem:[%s523_s0 + $0x38] sm:$0xff]  ;;  %v218_v40 = vld [vmem:[%s524_s2] ss:$0 sm:$0xff] }
   0xc   :  { %v29_v39 = vld [vmem:[%s523_s0 + $0x78] sm:$0xff] }
   0xd   :  { %318 = vmatpush3.bf16.msra.mxu0 %v315_v8  ;;  %349 = vmatpush3.bf16.msra.mxu1 %v315_v8 }
   0xe   :  { %320 = vmatprep.subr.bf16.mxu0 %v319_v13  ;;  %342 = vmatprep.subr.bf16.mxu1 %v319_v13 }
  0x11   :  { %322 = vmatpush3.bf16.msra.mxu0 %v319_v13  ;;  %350 = vmatpush3.bf16.msra.mxu1 %v319_v13 }
  0x12   :  { %324 = vmatprep.subr.bf16.mxu0 %v323_v16  ;;  %343 = vmatprep.subr.bf16.mxu1 %v323_v16 }
  0x15   :  { %326 = vmatpush3.bf16.msra.mxu0 %v323_v16  ;;  %351 = vmatpush3.bf16.msra.mxu1 %v323_v16 }
  0x16   :  { %328 = vmatprep.subr.bf16.mxu0 %v327_v19  ;;  %344 = vmatprep.subr.bf16.mxu1 %v327_v19 }
  0x19   :  { %330 = vmatpush3.bf16.msra.mxu0 %v327_v19  ;;  %352 = vmatpush3.bf16.msra.mxu1 %v327_v19 }
  0x1a   :  { %332 = vmatprep.subr.bf16.mxu0 %v331_v22  ;;  %345 = vmatprep.subr.bf16.mxu1 %v331_v22 }
  0x1d   :  { %334 = vmatpush3.bf16.msra.mxu0 %v331_v22  ;;  %353 = vmatpush3.bf16.msra.mxu1 %v331_v22 }
  0x1e   :  { %336 = vmatprep.subr.bf16.mxu0 %v335_v25  ;;  %346 = vmatprep.subr.bf16.mxu1 %v335_v25 }
  0x21   :  { %338 = vmatpush3.bf16.msra.mxu0 %v335_v25  ;;  %354 = vmatpush3.bf16.msra.mxu1 %v335_v25 }
  0x24   :  { %284 = vmatmul.mubr.f32.vlgmr.msra.gmra.mrb[0].mxu0 %v15_v26  ;;  %296 = vmatmul.mubr.f32.vlgmr.msra.gmra.mrb[0].mxu1 %v23_v27 }
  0x25   :  { %286 = vmatprep.mubr.f32.mxu0 %v16_v28  ;;  %298 = vmatprep.mubr.f32.mxu1 %v24_v29 }
  0x28   :  { %287 = vmatmul.mubr.f32.gmra.mrb[2].mxu0 %v17_v30  ;;  %299 = vmatmul.mubr.f32.gmra.mrb[2].mxu1 %v25_v31 }
  0x29   :  { %289 = vmatprep.mubr.f32.mxu0 %v18_v32  ;;  %301 = vmatprep.mubr.f32.mxu1 %v26_v33 }
  0x2c   :  { %290 = vmatmul.mubr.f32.gmra.mrb[4].mxu0 %v19_v34  ;;  %302 = vmatmul.mubr.f32.gmra.mrb[4].mxu1 %v27_v35 }
  0x2d   :  { %292 = vmatprep.mubr.f32.mxu0 %v20_v36  ;;  %304 = vmatprep.mubr.f32.mxu1 %v28_v37 }
  0x30   :  { %293 = vmatmul.mubr.f32.gmra.mrb[6].mxu0 %v21_v38  ;;  %305 = vmatmul.mubr.f32.gmra.mrb[6].mxu1 %v29_v39 }
  0xf7   :  { %v285_v41 = vpop.f32.mrb[0].mxu0  ;;  %v297_v42 = vpop.f32.mrb[0].mxu1 }
  0xf8   :  { %v125_v43 = vadd.f32 %v285_v41, %v218_v40  ;;  %v165_v44 = vadd.f32 %v297_v42, %v218_v40  ;;  %v119_v45 = vpop.f32.mrb[1].mxu0  ;;  %v159_v46 = vpop.f32.mrb[1].mxu1 }
  0xf9   :  { %v120_v47 = vadd.f32 %v218_v40, %v119_v45  ;;  %v160_v48 = vadd.f32 %v218_v40, %v159_v46 }
  0xfa   :  { %199 = vst [vmem:[%s525_s3 + $0x8] sm:$0xff] %v125_v43  ;;  %207 = vst [vmem:[%s525_s3 + $0x48] sm:$0xff] %v165_v44 }
  0xfb   :  { %198 = vst [vmem:[%s525_s3] sm:$0xff] %v120_v47  ;;  %206 = vst [vmem:[%s525_s3 + $0x40] sm:$0xff] %v160_v48  ;;  %v288_v49 = vpop.f32.mrb[2].mxu0  ;;  %v300_v50 = vpop.f32.mrb[2].mxu1 }
  0xfc   :  { %v135_v51 = vadd.f32 %v288_v49, %v218_v40  ;;  %v175_v52 = vadd.f32 %v300_v50, %v218_v40  ;;  %v129_v53 = vpop.f32.mrb[3].mxu0  ;;  %v169_v54 = vpop.f32.mrb[3].mxu1 }
  0xfd   :  { %v130_v55 = vadd.f32 %v218_v40, %v129_v53  ;;  %v170_v56 = vadd.f32 %v218_v40, %v169_v54 }
  0xfe   :  { %201 = vst [vmem:[%s525_s3 + $0x18] sm:$0xff] %v135_v51  ;;  %209 = vst [vmem:[%s525_s3 + $0x58] sm:$0xff] %v175_v52 }
  0xff   :  { %200 = vst [vmem:[%s525_s3 + $0x10] sm:$0xff] %v130_v55  ;;  %208 = vst [vmem:[%s525_s3 + $0x50] sm:$0xff] %v170_v56  ;;  %v291_v57 = vpop.f32.mrb[4].mxu0  ;;  %v303_v58 = vpop.f32.mrb[4].mxu1 }
 0x100   :  { %v145_v59 = vadd.f32 %v291_v57, %v218_v40  ;;  %v185_v60 = vadd.f32 %v303_v58, %v218_v40  ;;  %v139_v61 = vpop.f32.mrb[5].mxu0  ;;  %v179_v62 = vpop.f32.mrb[5].mxu1 }
 0x101   :  { %v140_v63 = vadd.f32 %v218_v40, %v139_v61  ;;  %v180_v0 = vadd.f32 %v218_v40, %v179_v62 }
 0x102   :  { %203 = vst [vmem:[%s525_s3 + $0x28] sm:$0xff] %v145_v59  ;;  %211 = vst [vmem:[%s525_s3 + $0x68] sm:$0xff] %v185_v60 }
 0x103   :  { %202 = vst [vmem:[%s525_s3 + $0x20] sm:$0xff] %v140_v63  ;;  %210 = vst [vmem:[%s525_s3 + $0x60] sm:$0xff] %v180_v0  ;;  %v294_v1 = vpop.f32.mrb[6].mxu0  ;;  %v306_v2 = vpop.f32.mrb[6].mxu1 }
 0x104   :  { %v155_v3 = vadd.f32 %v294_v1, %v218_v40  ;;  %v195_v4 = vadd.f32 %v306_v2, %v218_v40  ;;  %v149_v5 = vpop.f32.mrb[7].mxu0  ;;  %v189_v6 = vpop.f32.mrb[7].mxu1 }
 0x105   :  { %v150_v7 = vadd.f32 %v218_v40, %v149_v5  ;;  %v190_v8 = vadd.f32 %v218_v40, %v189_v6 }
 0x106   :  { %205 = vst [vmem:[%s525_s3 + $0x38] sm:$0xff] %v155_v3  ;;  %213 = vst [vmem:[%s525_s3 + $0x78] sm:$0xff] %v195_v4 }
 0x107   :  { %204 = vst [vmem:[%s525_s3 + $0x30] sm:$0xff] %v150_v7  ;;  %212 = vst [vmem:[%s525_s3 + $0x70] sm:$0xff] %v190_v8 }

</bundles_post_ra>
